<compile_context>
chip_gen: v6e
topology: v6e:2x2x1
jax: 0.10.0
libtpu: 0.0.40
codegen_flags: <defaults>
</compile_context>

<pallas_src>
import functools

import jax
import jax.numpy as jnp
from jax import lax
from jax.experimental import pallas as pl
from jax.experimental.pallas import tpu as pltpu


def _loss_kernel(params_ref,   # SMEM (11,) f32
                 logits_ref,   # VMEM (1, C, H, W) f32
                 teacher_ref,  # VMEM (1, C, H, W) f32
                 labels_ref,   # VMEM (1, H, W) i32
                 loss_ref,     # VMEM (1, H, W) f32 out: per-pixel LS+SVLS CE loss
                 w_ref):       # VMEM (1, H, W) f32 out: per-pixel curriculum weight
    _, C, H, W = logits_ref.shape
    lab = labels_ref[0]                          # (H, W) int32

    tap_w0 = params_ref[0]
    tap_w1 = params_ref[1]
    tap_w2 = params_ref[2]
    tap_h0 = params_ref[3]
    tap_h1 = params_ref[4]
    tap_h2 = params_ref[5]
    center_coef = params_ref[6]
    smooth_on = params_ref[7]
    smooth_off = params_ref[8]
    inv_opt_t = params_ref[9]
    mu = params_ref[10]

    # Small boundary masks for replicate padding, hoisted once and reused.
    row_id = lax.broadcasted_iota(jnp.int32, (H, W), 0)
    col_id = lax.broadcasted_iota(jnp.int32, (H, W), 1)
    h_first = (row_id == 0)[None]                # (1, H, W) bool
    h_last = (row_id == H - 1)[None]
    w_first = (col_id == 0)[None]
    w_last = (col_id == W - 1)[None]

    def shift(v, d, axis, first_mask, last_mask):
        # Replicate-padded shift for |d| == 1: out[..., p, ...] = v[..., clamp(p+d), ...]
        n = v.shape[axis]
        rolled = pltpu.roll(v, shift=(n - d) % n, axis=axis)   # non-negative shift
        if d > 0:
            return jnp.where(last_mask, v, rolled)
        return jnp.where(first_mask, v, rolled)

    # Fused one-hot + label smoothing.
    chan = lax.broadcasted_iota(jnp.int32, (C, H, W), 0)
    is_label = chan == lab[None, :, :]           # (C, H, W) bool (reused below)
    smooth = jnp.where(is_label, smooth_on, smooth_off)

    # Separable 3x3 SVLS conv with replicate padding; all scalar divisions
    # (1/neighbors_sum, 1/svls_kernel.sum()) are folded into tap_h/center_coef.
    row = (tap_w1 * smooth
           + tap_w0 * shift(smooth, -1, 2, w_first, w_last)
           + tap_w2 * shift(smooth, 1, 2, w_first, w_last))
    ls_svls = (tap_h1 * row
               + tap_h0 * shift(row, -1, 1, h_first, h_last)
               + tap_h2 * shift(row, 1, 1, h_first, h_last)
               + center_coef * smooth)

    # Cross entropy against log_softmax(logits, dim=channel).
    x = logits_ref[0]
    xs = x - jnp.max(x, axis=0, keepdims=True)
    logsm = xs - jnp.log(jnp.sum(jnp.exp(xs), axis=0, keepdims=True))
    loss_ref[0] = -(ls_svls * logsm).sum(axis=0)

    # Curriculum weights: softmax(teacher / opt_t)[label] >= mu, without
    # materializing the full per-class probability tensor.
    tz = teacher_ref[0] * inv_opt_t
    tm = jnp.max(tz, axis=0, keepdims=True)
    sumexp = jnp.sum(jnp.exp(tz - tm), axis=0)                      # (H, W)
    tz_true = jnp.max(jnp.where(is_label, tz, -jnp.inf), axis=0)    # (H, W)
    true_num = jnp.exp(tz_true - tm[0])                             # (H, W)
    w_ref[0] = jnp.where(true_num >= mu * sumexp, 1.0, 0.0).astype(jnp.float32)


def _svls_separable_params(ksize, sigma):
    # Matches get_gaussian_kernel_2d / get_svls_filter_2d for ksize == 3.
    # The 2D Gaussian is exactly outer(gx, gx) with gx = e / sum(e).
    mean = (ksize - 1) / 2.0
    variance = sigma ** 2.0
    d = jnp.arange(ksize, dtype=jnp.float32) - mean
    e = jnp.exp(-(d ** 2) / (2.0 * variance + 1e-16))
    gx = e / jnp.sum(e)                            # 1D taps
    g_cc = gx[1] * gx[1]                           # centre of the 2D Gaussian
    neighbors_sum = 1.0 - g_cc + 1e-16
    ksum = (1.0 - g_cc + neighbors_sum) / neighbors_sum   # svls_kernel.sum()
    scale = 1.0 / (neighbors_sum * ksum)           # folds both divisions
    tap_w = gx
    tap_h = gx * scale
    center_coef = scale * (neighbors_sum - g_cc)
    return tap_w, tap_h, center_coef


@functools.partial(jax.jit, static_argnames=("ksize",))
def curriculum_ce_loss_ls_svls(outputs, teacher_out, labels,
                               label_smoothing, sigma, mu, opt_t, *, ksize=3):
    assert ksize == 3  # TODO(synk): generalize taps / replicate shifts for ksize=5
    N, C, H, W = outputs.shape
    tap_w, tap_h, center_coef = _svls_separable_params(ksize, sigma)

    ls = jnp.asarray(label_smoothing, jnp.float32)
    params = jnp.stack([
        tap_w[0], tap_w[1], tap_w[2],
        tap_h[0], tap_h[1], tap_h[2],
        center_coef,
        1.0 - ls + ls / C,                 # smoothed one-hot "on" value
        ls / C,                            # smoothed one-hot "off" value
        1.0 / jnp.asarray(opt_t, jnp.float32),
        jnp.asarray(mu, jnp.float32),
    ]).astype(jnp.float32)                 # (11,)

    loss_px, weights = pl.pallas_call(
        _loss_kernel,
        out_shape=(jax.ShapeDtypeStruct((N, H, W), jnp.float32),
                   jax.ShapeDtypeStruct((N, H, W), jnp.float32)),
        grid_spec=pltpu.PrefetchScalarGridSpec(
            num_scalar_prefetch=1,          # params -> SMEM
            grid=(N,),
            in_specs=[
                pl.BlockSpec((1, C, H, W), lambda n, p: (n, 0, 0, 0)),
                pl.BlockSpec((1, C, H, W), lambda n, p: (n, 0, 0, 0)),
                pl.BlockSpec((1, H, W), lambda n, p: (n, 0, 0)),
            ],
            out_specs=(
                pl.BlockSpec((1, H, W), lambda n, p: (n, 0, 0)),
                pl.BlockSpec((1, H, W), lambda n, p: (n, 0, 0)),
            ),
        ),
        compiler_params=pltpu.CompilerParams(
            dimension_semantics=("parallel",),
            vmem_limit_bytes=64 * 1024 * 1024,
        ),
    )(params, outputs, teacher_out, labels)
    # TODO(synk): for large C*H*W (e.g. 19x512x512 on v7x) tile H with a 1-row
    # halo instead of holding one full image per grid step.

    # PyTorch broadcasts (N,1,H,W) weights against (N,H,W) loss to (N,N,H,W)
    # before the global mean; the reduced form below is the same sum reordered,
    # without ever materializing the N^2 tensor.
    sum_w = jnp.sum(weights, axis=0)       # (H, W)
    sum_l = jnp.sum(loss_px, axis=0)       # (H, W)
    return jnp.sum(sum_w * sum_l) / (N * N * H * W)


if __name__ == "__main__":
    key = jax.random.PRNGKey(0)
    k1, k2, k3 = jax.random.split(key, 3)
    N, C, H, W = 2, 4, 16, 16
    outputs = jax.random.normal(k1, (N, C, H, W), dtype=jnp.float32)
    teacher_out = jax.random.normal(k2, (N, C, H, W), dtype=jnp.float32)
    labels = jax.random.randint(k3, (N, H, W), 0, C, dtype=jnp.int32)

    loss = curriculum_ce_loss_ls_svls(
        outputs, teacher_out, labels,
        label_smoothing=0.1, sigma=1.0, mu=0.3, opt_t=2.0, ksize=3)
    jax.block_until_ready(loss)
    print("KERNEL_OK")
</pallas_src>

<mosaic_0001>
module attributes {stable_mosaic.version = 11 : i64} {
  func.func @_loss_kernel(%arg0: i32, %arg1: memref<11xf32, #tpu.memory_space<smem>>, %arg2: memref<1x4x16x16xf32, #tpu.memory_space<vmem>>, %arg3: memref<1x4x16x16xf32, #tpu.memory_space<vmem>>, %arg4: memref<1x16x16xi32, #tpu.memory_space<vmem>>, %arg5: memref<1x16x16xf32, #tpu.memory_space<vmem>>, %arg6: memref<1x16x16xf32, #tpu.memory_space<vmem>>) attributes {dimension_semantics = [#tpu.dimension_semantics<parallel>], iteration_bounds = array<i64: 2>, scalar_prefetch = 1 : i64, scratch_operands = 0 : i64, tpu.core_type = #tpu.core_type<tc>, window_params = [{transform_indices = @transform_0, window_bounds = array<i64: 1, 4, 16, 16>}, {transform_indices = @transform_1, window_bounds = array<i64: 1, 4, 16, 16>}, {transform_indices = @transform_2, window_bounds = array<i64: 1, 16, 16>}, {transform_indices = @transform_3, window_bounds = array<i64: 1, 16, 16>}, {transform_indices = @transform_4, window_bounds = array<i64: 1, 16, 16>}]} {
    %c0 = arith.constant 0 : index
    %c0_0 = arith.constant 0 : index
    %c0_1 = arith.constant 0 : index
    %0 = vector.load %arg4[%c0, %c0_0, %c0_1] : memref<1x16x16xi32, #tpu.memory_space<vmem>>, vector<1x16x16xi32>
    %1 = vector.shape_cast %0 : vector<1x16x16xi32> to vector<16x16xi32>
    %c0_2 = arith.constant 0 : index
    %2 = memref.load %arg1[%c0_2] : memref<11xf32, #tpu.memory_space<smem>>
    %c1 = arith.constant 1 : index
    %3 = memref.load %arg1[%c1] : memref<11xf32, #tpu.memory_space<smem>>
    %c2 = arith.constant 2 : index
    %4 = memref.load %arg1[%c2] : memref<11xf32, #tpu.memory_space<smem>>
    %c3 = arith.constant 3 : index
    %5 = memref.load %arg1[%c3] : memref<11xf32, #tpu.memory_space<smem>>
    %c4 = arith.constant 4 : index
    %6 = memref.load %arg1[%c4] : memref<11xf32, #tpu.memory_space<smem>>
    %c5 = arith.constant 5 : index
    %7 = memref.load %arg1[%c5] : memref<11xf32, #tpu.memory_space<smem>>
    %c6 = arith.constant 6 : index
    %8 = memref.load %arg1[%c6] : memref<11xf32, #tpu.memory_space<smem>>
    %c7 = arith.constant 7 : index
    %9 = memref.load %arg1[%c7] : memref<11xf32, #tpu.memory_space<smem>>
    %c8 = arith.constant 8 : index
    %10 = memref.load %arg1[%c8] : memref<11xf32, #tpu.memory_space<smem>>
    %c9 = arith.constant 9 : index
    %11 = memref.load %arg1[%c9] : memref<11xf32, #tpu.memory_space<smem>>
    %c10 = arith.constant 10 : index
    %12 = memref.load %arg1[%c10] : memref<11xf32, #tpu.memory_space<smem>>
    %13 = tpu.iota {dimensions = array<i32: 0>} : vector<16x16xi32>
    %14 = tpu.iota {dimensions = array<i32: 1>} : vector<16x16xi32>
    %c0_i32 = arith.constant 0 : i32
    %15 = vector.broadcast %c0_i32 : i32 to vector<16x16xi32>
    %16 = arith.cmpi eq, %13, %15 : vector<16x16xi32>
    %17 = vector.shape_cast %16 : vector<16x16xi1> to vector<1x16x16xi1>
    %c15_i32 = arith.constant 15 : i32
    %18 = vector.broadcast %c15_i32 : i32 to vector<16x16xi32>
    %19 = arith.cmpi eq, %13, %18 : vector<16x16xi32>
    %20 = vector.shape_cast %19 : vector<16x16xi1> to vector<1x16x16xi1>
    %c0_i32_3 = arith.constant 0 : i32
    %21 = vector.broadcast %c0_i32_3 : i32 to vector<16x16xi32>
    %22 = arith.cmpi eq, %14, %21 : vector<16x16xi32>
    %23 = vector.shape_cast %22 : vector<16x16xi1> to vector<1x16x16xi1>
    %c15_i32_4 = arith.constant 15 : i32
    %24 = vector.broadcast %c15_i32_4 : i32 to vector<16x16xi32>
    %25 = arith.cmpi eq, %14, %24 : vector<16x16xi32>
    %26 = vector.shape_cast %25 : vector<16x16xi1> to vector<1x16x16xi1>
    %27 = tpu.iota {dimensions = array<i32: 0>} : vector<4x16x16xi32>
    %28 = vector.shape_cast %1 : vector<16x16xi32> to vector<1x16x16xi32>
    %29 = vector.broadcast %28 : vector<1x16x16xi32> to vector<4x16x16xi32>
    %30 = arith.cmpi eq, %27, %29 : vector<4x16x16xi32>
    %31 = vector.broadcast %9 : f32 to vector<4x16x16xf32>
    %32 = vector.broadcast %10 : f32 to vector<4x16x16xf32>
    %33 = arith.select %30, %31, %32 : vector<4x16x16xi1>, vector<4x16x16xf32>
    %34 = vector.broadcast %3 : f32 to vector<4x16x16xf32>
    %35 = arith.mulf %34, %33 : vector<4x16x16xf32>
    %c1_i32 = arith.constant 1 : i32
    %36 = tpu.dynamic_rotate %33 by %c1_i32 dim 2 : vector<4x16x16xf32>, i32 -> vector<4x16x16xf32>
    %37 = vector.shape_cast %23 : vector<1x16x16xi1> to vector<1x16x16xi1>
    %38 = vector.broadcast %37 : vector<1x16x16xi1> to vector<4x16x16xi1>
    %39 = arith.select %38, %33, %36 : vector<4x16x16xi1>, vector<4x16x16xf32>
    %40 = vector.broadcast %2 : f32 to vector<4x16x16xf32>
    %41 = arith.mulf %40, %39 : vector<4x16x16xf32>
    %42 = arith.addf %35, %41 : vector<4x16x16xf32>
    %c15_i32_5 = arith.constant 15 : i32
    %43 = tpu.dynamic_rotate %33 by %c15_i32_5 dim 2 : vector<4x16x16xf32>, i32 -> vector<4x16x16xf32>
    %44 = vector.shape_cast %26 : vector<1x16x16xi1> to vector<1x16x16xi1>
    %45 = vector.broadcast %44 : vector<1x16x16xi1> to vector<4x16x16xi1>
    %46 = arith.select %45, %33, %43 : vector<4x16x16xi1>, vector<4x16x16xf32>
    %47 = vector.broadcast %4 : f32 to vector<4x16x16xf32>
    %48 = arith.mulf %47, %46 : vector<4x16x16xf32>
    %49 = arith.addf %42, %48 : vector<4x16x16xf32>
    %50 = vector.broadcast %6 : f32 to vector<4x16x16xf32>
    %51 = arith.mulf %50, %49 : vector<4x16x16xf32>
    %c1_i32_6 = arith.constant 1 : i32
    %52 = tpu.dynamic_rotate %49 by %c1_i32_6 dim 1 : vector<4x16x16xf32>, i32 -> vector<4x16x16xf32>
    %53 = vector.shape_cast %17 : vector<1x16x16xi1> to vector<1x16x16xi1>
    %54 = vector.broadcast %53 : vector<1x16x16xi1> to vector<4x16x16xi1>
    %55 = arith.select %54, %49, %52 : vector<4x16x16xi1>, vector<4x16x16xf32>
    %56 = vector.broadcast %5 : f32 to vector<4x16x16xf32>
    %57 = arith.mulf %56, %55 : vector<4x16x16xf32>
    %58 = arith.addf %51, %57 : vector<4x16x16xf32>
    %c15_i32_7 = arith.constant 15 : i32
    %59 = tpu.dynamic_rotate %49 by %c15_i32_7 dim 1 : vector<4x16x16xf32>, i32 -> vector<4x16x16xf32>
    %60 = vector.shape_cast %20 : vector<1x16x16xi1> to vector<1x16x16xi1>
    %61 = vector.broadcast %60 : vector<1x16x16xi1> to vector<4x16x16xi1>
    %62 = arith.select %61, %49, %59 : vector<4x16x16xi1>, vector<4x16x16xf32>
    %63 = vector.broadcast %7 : f32 to vector<4x16x16xf32>
    %64 = arith.mulf %63, %62 : vector<4x16x16xf32>
    %65 = arith.addf %58, %64 : vector<4x16x16xf32>
    %66 = vector.broadcast %8 : f32 to vector<4x16x16xf32>
    %67 = arith.mulf %66, %33 : vector<4x16x16xf32>
    %68 = arith.addf %65, %67 : vector<4x16x16xf32>
    %c0_8 = arith.constant 0 : index
    %c0_9 = arith.constant 0 : index
    %c0_10 = arith.constant 0 : index
    %c0_11 = arith.constant 0 : index
    %69 = vector.load %arg2[%c0_8, %c0_9, %c0_10, %c0_11] : memref<1x4x16x16xf32, #tpu.memory_space<vmem>>, vector<1x4x16x16xf32>
    %70 = vector.shape_cast %69 : vector<1x4x16x16xf32> to vector<4x16x16xf32>
    %cst = arith.constant dense<0xFF800000> : vector<16x16xf32>
    %71 = vector.multi_reduction <maximumf>, %70, %cst [0] : vector<4x16x16xf32> to vector<16x16xf32>
    %72 = vector.shape_cast %71 : vector<16x16xf32> to vector<1x16x16xf32>
    %73 = vector.broadcast %72 : vector<1x16x16xf32> to vector<4x16x16xf32>
    %74 = arith.subf %70, %73 : vector<4x16x16xf32>
    %75 = math.exp %74 : vector<4x16x16xf32>
    %cst_12 = arith.constant dense<0.000000e+00> : vector<16x16xf32>
    %76 = vector.multi_reduction <add>, %75, %cst_12 [0] : vector<4x16x16xf32> to vector<16x16xf32>
    %77 = vector.shape_cast %76 : vector<16x16xf32> to vector<1x16x16xf32>
    %78 = math.log %77 : vector<1x16x16xf32>
    %79 = vector.broadcast %78 : vector<1x16x16xf32> to vector<4x16x16xf32>
    %80 = arith.subf %74, %79 : vector<4x16x16xf32>
    %81 = arith.mulf %68, %80 : vector<4x16x16xf32>
    %cst_13 = arith.constant dense<0.000000e+00> : vector<16x16xf32>
    %82 = vector.multi_reduction <add>, %81, %cst_13 [0] : vector<4x16x16xf32> to vector<16x16xf32>
    %cst_14 = arith.constant 0.000000e+00 : f32
    %83 = vector.broadcast %cst_14 : f32 to vector<16x16xf32>
    %84 = arith.subf %83, %82 : vector<16x16xf32>
    %c0_15 = arith.constant 0 : index
    %c0_16 = arith.constant 0 : index
    %c0_17 = arith.constant 0 : index
    %85 = vector.load %arg5[%c0_15, %c0_16, %c0_17] : memref<1x16x16xf32, #tpu.memory_space<vmem>>, vector<1x16x16xf32>
    %86 = vector.shape_cast %85 : vector<1x16x16xf32> to vector<16x16xf32>
    %87 = vector.shape_cast %84 : vector<16x16xf32> to vector<1x16x16xf32>
    tpu.vector_store %arg5[%c0_15, %c0_16, %c0_17], %87 {strides = array<i32>} : memref<1x16x16xf32, #tpu.memory_space<vmem>>, vector<1x16x16xf32>,
    %c0_18 = arith.constant 0 : index
    %c0_19 = arith.constant 0 : index
    %c0_20 = arith.constant 0 : index
    %c0_21 = arith.constant 0 : index
    %88 = vector.load %arg3[%c0_18, %c0_19, %c0_20, %c0_21] : memref<1x4x16x16xf32, #tpu.memory_space<vmem>>, vector<1x4x16x16xf32>
    %89 = vector.shape_cast %88 : vector<1x4x16x16xf32> to vector<4x16x16xf32>
    %90 = vector.broadcast %11 : f32 to vector<4x16x16xf32>
    %91 = arith.mulf %89, %90 : vector<4x16x16xf32>
    %cst_22 = arith.constant dense<0xFF800000> : vector<16x16xf32>
    %92 = vector.multi_reduction <maximumf>, %91, %cst_22 [0] : vector<4x16x16xf32> to vector<16x16xf32>
    %93 = vector.shape_cast %92 : vector<16x16xf32> to vector<1x16x16xf32>
    %94 = vector.broadcast %93 : vector<1x16x16xf32> to vector<4x16x16xf32>
    %95 = arith.subf %91, %94 : vector<4x16x16xf32>
    %96 = math.exp %95 : vector<4x16x16xf32>
    %cst_23 = arith.constant dense<0.000000e+00> : vector<16x16xf32>
    %97 = vector.multi_reduction <add>, %96, %cst_23 [0] : vector<4x16x16xf32> to vector<16x16xf32>
    %cst_24 = arith.constant 0xFF800000 : f32
    %98 = vector.broadcast %cst_24 : f32 to vector<4x16x16xf32>
    %99 = arith.select %30, %91, %98 : vector<4x16x16xi1>, vector<4x16x16xf32>
    %cst_25 = arith.constant dense<0xFF800000> : vector<16x16xf32>
    %100 = vector.multi_reduction <maximumf>, %99, %cst_25 [0] : vector<4x16x16xf32> to vector<16x16xf32>
    %101 = vector.shape_cast %93 : vector<1x16x16xf32> to vector<16x16xf32>
    %102 = arith.subf %100, %101 : vector<16x16xf32>
    %103 = math.exp %102 : vector<16x16xf32>
    %104 = vector.broadcast %12 : f32 to vector<16x16xf32>
    %105 = arith.mulf %104, %97 : vector<16x16xf32>
    %106 = arith.cmpf oge, %103, %105 : vector<16x16xf32>
    %cst_26 = arith.constant 1.000000e+00 : f32
    %cst_27 = arith.constant 0.000000e+00 : f32
    %107 = vector.broadcast %cst_26 : f32 to vector<16x16xf32>
    %108 = vector.broadcast %cst_27 : f32 to vector<16x16xf32>
    %109 = arith.select %106, %107, %108 : vector<16x16xi1>, vector<16x16xf32>
    %c0_28 = arith.constant 0 : index
    %c0_29 = arith.constant 0 : index
    %c0_30 = arith.constant 0 : index
    %110 = vector.load %arg6[%c0_28, %c0_29, %c0_30] : memref<1x16x16xf32, #tpu.memory_space<vmem>>, vector<1x16x16xf32>
    %111 = vector.shape_cast %110 : vector<1x16x16xf32> to vector<16x16xf32>
    %112 = vector.shape_cast %109 : vector<16x16xf32> to vector<1x16x16xf32>
    tpu.vector_store %arg6[%c0_28, %c0_29, %c0_30], %112 {strides = array<i32>} : memref<1x16x16xf32, #tpu.memory_space<vmem>>, vector<1x16x16xf32>,
    return
  }
  func.func @transform_0(%arg0: i32, %arg1: memref<11xf32, #tpu.memory_space<smem>>) -> (i32, i32, i32, i32) {
    %c0_i32 = arith.constant 0 : i32
    %c0_i32_0 = arith.constant 0 : i32
    %c0_i32_1 = arith.constant 0 : i32
    %c0_i32_2 = arith.constant 0 : i32
    return %arg0, %c0_i32, %c0_i32_0, %c0_i32_1 : i32, i32, i32, i32
  }
  func.func @transform_1(%arg0: i32, %arg1: memref<11xf32, #tpu.memory_space<smem>>) -> (i32, i32, i32, i32) {
    %c0_i32 = arith.constant 0 : i32
    %c0_i32_0 = arith.constant 0 : i32
    %c0_i32_1 = arith.constant 0 : i32
    %c0_i32_2 = arith.constant 0 : i32
    return %arg0, %c0_i32, %c0_i32_0, %c0_i32_1 : i32, i32, i32, i32
  }
  func.func @transform_2(%arg0: i32, %arg1: memref<11xf32, #tpu.memory_space<smem>>) -> (i32, i32, i32) {
    %c0_i32 = arith.constant 0 : i32
    %c0_i32_0 = arith.constant 0 : i32
    %c0_i32_1 = arith.constant 0 : i32
    return %arg0, %c0_i32, %c0_i32_0 : i32, i32, i32
  }
  func.func @transform_3(%arg0: i32, %arg1: memref<11xf32, #tpu.memory_space<smem>>) -> (i32, i32, i32) {
    %c0_i32 = arith.constant 0 : i32
    %c0_i32_0 = arith.constant 0 : i32
    %c0_i32_1 = arith.constant 0 : i32
    return %arg0, %c0_i32, %c0_i32_0 : i32, i32, i32
  }
  func.func @transform_4(%arg0: i32, %arg1: memref<11xf32, #tpu.memory_space<smem>>) -> (i32, i32, i32) {
    %c0_i32 = arith.constant 0 : i32
    %c0_i32_0 = arith.constant 0 : i32
    %c0_i32_1 = arith.constant 0 : i32
    return %arg0, %c0_i32, %c0_i32_0 : i32, i32, i32
  }
}

</mosaic_0001>

<bundles_post_ra>
// kernel: curriculum_ce_loss_ls_svls.1
= control target key start
LH: loop header
LB: loop body
LE: loop exit
PB: predicated region body
PF: predicated region fallthrough
CT: control target
= control target key end

     0   :  { %s1923_s0 = inlined_call_operand.vmem [shape: f32[11], index: 0, kind: input, shape index: {}]   ;;  %s1924_s1 = inlined_call_operand.hbm [shape: f32[2,4,16,16], index: 1, kind: input, shape index: {}]   ;;  %s1925_s2 = inlined_call_operand.hbm [shape: f32[2,4,16,16], index: 2, kind: input, shape index: {}]   ;;  %s1926_s3 = inlined_call_operand.vmem [shape: s32[2,16,16], index: 3, kind: input, shape index: {}]   ;;  %s1927_s4 = inlined_call_operand.vmem [shape: f32[2,16,16], index: 4, kind: output, shape index: {0}]   ;;  %s1928_s5 = inlined_call_operand.vmem [shape: f32[2,16,16], index: 5, kind: output, shape index: {1}]  }
   0x1   :  { %s11_s20 = sshll.u32 %s1923_s0, 4  ;;  %s12_s20 = int_to_ptr.vmem [resolvable:$true] %s11_s20 }
   0x2   :  { %s1092_s21 = scalar_lea.vmem %s12_s20, 16  ;;  %p1097_p1 = scmp.lt.s32.totalorder %s12_s20, %s12_s20 }
   0x3   :  { %p1093_p0 = scmp.ne.s32.totalorder %s12_s20, %s1092_s21  ;;  %p1098_p2 = scmp.lt.s32.totalorder %s1092_s21, %s1092_s21 }
   0x5   :  { %p1099_p3 = por %p1098_p2, %p1097_p1 }
   0x7   :  { %p1100_p4 = pnand %p1099_p3, %p1093_p0 }
   0x9   :  { %1103 = shalt.err (!%p1100_p4)  }
   0xa   :  { %s1202_s22 = smov [#allocation3]  }
   0xb   :  { %14 = dma.vmem_to_smem %s12_s20, 16, %s1202_s22, [#allocation2] }
   0xc   :  { %1176 = dma.done.wait [#allocation2], 16 }
   0xd   :  { %1177 = vsyncadd [#allocation2], 4294967280 }
   0xe   :  { %16 = sfence }
   0xf   :  { %17 = vsyncpa [#allocation5], 0 }
  0x10   :  { %19 = vsyncpa [#allocation5 + $0x1], 0 }
  0x11   :  { %20 = vsyncpa [#allocation7], 0 }
  0x12   :  { %22 = vsyncpa [#allocation7 + $0x1], 0  ;;  %s1244_s23 = smov 0   ;;  %s1246_s0 = smov 0  }
  0x13   :  { %s1248_s24 = smov 0   ;;  %s1250_s25 = smov 0  }
  0x14 LB: > { %s1263_s26 = sadd.s32 4294967295, %s1200_s25   ;;  %s1266_s27 = sadd.s32 1, %s1200_s25   ;;  %s1200_s25 = sphi %s1250_s25, %s1941_s25   ;;  %s1196_s24 = sphi %s1248_s24, %s1940_s24   ;;  %s1192_s0 = sphi %s1246_s0, %s1939_s0   ;;  %s1188_s23 = sphi %s1244_s23, %s1938_s23  }
  0x15   : > { %s32_s28 = ssub.s32 %s1200_s25, %s1266_s27  ;;  %s35_s29 = sadd.s32 1, %s1196_s24 }
  0x16   : > { %p33_p5 = scmp.eq.s32.totalorder %s32_s28, 0  ;;  %p42_p6 = scmp.ne.s32.totalorder %s1196_s24, %s1192_s0 }
  0x17   : > { %p43_p7 = scmp.eq.s32.totalorder %s1200_s25, 0  ;;  %p48_p8 = scmp.ne.s32.totalorder %s1192_s0, %s1188_s23 }
  0x18   : > { %s1276_s30 = scalar_select %p33_p5, %s1196_s24, %s35_s29  }
  0x19   : > { %p44_p9 = por %p43_p7, %p42_p6  ;;  %p49_p10 = scmp.eq.s32.totalorder %s1263_s26, 0 }
  0x1a   : > { %p1012_p11 = scmp.lt.s32.totalorder %s1200_s25, 2  ;;  %s1285_s7 = sand.u32 1, %s1196_s24  }
  0x1b   : > { %p1280_p12 = por %p49_p10, %p48_p8  ;;  %s969_s8 = sshll.u32 %s1285_s7, 6 }
  0x1c   : > { %s996_s9 = sshll.u32 %s1200_s25, 10  ;;  %s180_s13 = scalar_lea.vmem [#allocation4], %s969_s8 }
  0x1d   : > { %s1930_s6 = scalar_select %p1280_p12, 1, 0 }
  0x1e   : > { %s1294_s12 = scalar_lea.hbm %s1924_s1, %s996_s9  ;;  %s187_s14 = sshll.u32 %s180_s13, 4  ;;  %s1298_s14 = int_to_ptr.vmem [resolvable:$true] %s187_s14 }
  0x1f   : > { %p1300_p13 = pnand %p1012_p11, %p44_p9  ;;  %s177_s16 = scalar_lea.sflag [#allocation5], %s1285_s7 }
  0x20   : > { %s1104_s17 = scalar_lea.hbm %s1294_s12, 1024  ;;  %s1109_s20 = scalar_lea.hbm %s1924_s1, 2048 }
  0x21   : > { %p1105_p1 = scmp.ne.s32.totalorder %s1294_s12, %s1104_s17  ;;  %p1106_p2 = pneg %p1300_p13 }
  0x22   : > { %p1110_p5 = scmp.lt.s32.totalorder %s1294_s12, %s1924_s1  ;;  %p1111_p6 = scmp.lt.s32.totalorder %s1109_s20, %s1104_s17 }
  0x23   : > { %p1107_p3 = pnand %p1106_p2, %p1105_p1 }
  0x24   : > { %p1112_p7 = por %p1111_p6, %p1110_p5 }
  0x25   : > { %p1108_p4 = pneg %p1107_p3 }
  0x27   : > { %p1113_p8 = pnand %p1112_p7, %p1108_p4 }
  0x29   : > { %1116 = shalt.err (!%p1113_p8)
}
  0x2a   : > { %s1117_s23 = scalar_lea.vmem %s1298_s14, 1024  ;;  %s1203_s28 = smov [#allocation4]  }
  0x2b   : > { %p1118_p9 = scmp.ne.s32.totalorder %s1298_s14, %s1117_s23  ;;  %s1122_s29 = sshll.u32 %s1203_s28, 4  ;;  %s1123_s29 = int_to_ptr.vmem [resolvable:$false] %s1122_s29 }
  0x2c   : > { %s1124_s10 = scalar_lea.vmem %s1123_s29, 2048  ;;  %p1125_p1 = scmp.lt.s32.totalorder %s1298_s14, %s1123_s29 }
  0x2d   : > { %p1120_p10 = pnand %p1118_p9, %p1106_p2  ;;  %p1126_p3 = scmp.lt.s32.totalorder %s1124_s10, %s1117_s23 }
  0x2f   : > { %p1121_p11 = pneg %p1120_p10  ;;  %p1127_p0 = por %p1126_p3, %p1125_p1 }
  0x31   : > { %p1128_p5 = pnand %p1127_p0, %p1121_p11 }
  0x33   : > { %1131 = shalt.err (!%p1128_p5)
}
  0x34   : > { %s1204_s11 = smov 128   ;;  %s1205_s13 = smov 8  }
  0x35   : > { %1008 = dma.hbm_to_vmem [thread:$0]  (!%p1300_p13), %s1294_s12, 1024, %s1298_s14, %s177_s16, %s1204_s11, %s1204_s11, %s1205_s13  }
  0x36   : > { %p224_p0 = scmp.lt.s32.totalorder %s1200_s25, 3  ;;  %s1341_s19 = scalar_lea.hbm %s1925_s2, %s996_s9 }
  0x37   : > { %p1932_p4 = scmp.ge.s32.totalorder %s1200_s25, 1  ;;  %s201_s21 = scalar_lea.vmem [#allocation6], %s969_s8 }
  0x38   : > { %s208_s22 = sshll.u32 %s201_s21, 4  ;;  %s198_s12 = scalar_lea.sflag [#allocation7], %s1285_s7  ;;  %s1351_s22 = int_to_ptr.vmem [resolvable:$true] %s208_s22 }
  0x39   : > { %p1345_p6 = pnand %p1932_p4, %p224_p0  ;;  %s1132_s14 = scalar_lea.hbm %s1341_s19, 1024 }
  0x3a   : > { %p1133_p7 = scmp.ne.s32.totalorder %s1341_s19, %s1132_s14  ;;  %s1137_s16 = scalar_lea.hbm %s1925_s2, 2048 }
  0x3b   : > { %p1138_p10 = scmp.lt.s32.totalorder %s1341_s19, %s1925_s2  ;;  %p1139_p11 = scmp.lt.s32.totalorder %s1137_s16, %s1132_s14 }
  0x3c   : > { %p1135_p8 = pnand %p1133_p7, %p1106_p2 }
  0x3d   : > { %p1140_p1 = por %p1139_p11, %p1138_p10 }
  0x3e   : > { %p1136_p9 = pneg %p1135_p8 }
  0x40   : > { %p1141_p3 = pnand %p1140_p1, %p1136_p9 }
  0x42   : > { %1144 = shalt.err (!%p1141_p3)
}
  0x43   : > { %s1145_s7 = scalar_lea.vmem %s1351_s22, 1024  ;;  %s1206_s8 = smov [#allocation6]  }
  0x44   : > { %p1146_p5 = scmp.ne.s32.totalorder %s1351_s22, %s1145_s7  ;;  %s1150_s29 = sshll.u32 %s1206_s8, 4  ;;  %s1151_s29 = int_to_ptr.vmem [resolvable:$false] %s1150_s29 }
  0x45   : > { %s1152_s10 = scalar_lea.vmem %s1151_s29, 2048  ;;  %p1153_p7 = scmp.lt.s32.totalorder %s1351_s22, %s1151_s29 }
  0x46   : > { %p1148_p0 = pnand %p1146_p5, %p1106_p2  ;;  %p1154_p8 = scmp.lt.s32.totalorder %s1152_s10, %s1145_s7 }
  0x48   : > { %p1149_p4 = pneg %p1148_p0  ;;  %p1155_p12 = por %p1154_p8, %p1153_p7 }
  0x4a   : > { %p1156_p10 = pnand %p1155_p12, %p1149_p4 }
  0x4c   : > { %1159 = shalt.err (!%p1156_p10)
}
  0x4d   : > { %1011 = dma.hbm_to_vmem [thread:$0]  (!%p1300_p13), %s1341_s19, 1024, %s1351_s22, %s198_s12, %s1204_s11, %s1204_s11, %s1205_s13  }
  0x4e   : > { %228 = sbr.rel (%p1345_p6) target bundleno = 505 (0x1f9), region = 32  ;;  %s230_s17 = sand.u32 (!%p1345_p6), 1, %s1192_s0  }
  0x4f   : > { %s976_s18 = sshll.u32 (!%p1345_p6), %s230_s17, 6  ;;  %s231_s21 = scalar_lea.sflag (!%p1345_p6), [#allocation5], %s230_s17 }
  0x50   : > { %s1382_s14 = scalar_lea.vmem (!%p1345_p6), [#allocation4], %s976_s18  ;;  %p1934_p12 = scmp.ne.s32.totalorder (!%p1345_p6), %s1930_s6, 0 }
  0x53   : > { %1179 = dma.done.wait (%p1934_p12), %s231_s21, 1024  }
  0x54   : > { %1181 = vsyncadd (%p1934_p12), %s231_s21, 4294966272  ;;  %s240_s15 = scalar_lea.sflag [#allocation7], %s230_s17  ;;  %s1388_s25 = scalar_lea.vmem [#allocation6], %s976_s18 }
  0x55   : > { %1183 = dma.done.wait (%p1934_p12), %s240_s15, 1024  }
  0x56   : > { %1185 = vsyncadd (%p1934_p12), %s240_s15, 4294966272  ;;  %p283_p13 = scmp.lt.s32.totalorder %s1263_s26, 1  ;;  %s990_s11 = sld [smem:[#allocation3 + $0x7]]  ;;  %v725_v4 = vld [vmem:[%s1388_s25] sm:$0xff]  ;;  %v727_v5 = vld [vmem:[%s1388_s25 + $0x10] sm:$0xff]  ;;  %vm634_vm6 = vcmask 130048  }
  0x57   : > { %s991_s19 = sld [smem:[#allocation3 + $0x8]]  ;;  %v726_v8 = vld [vmem:[%s1388_s25 + $0x8] sm:$0xff]  ;;  %v729_v9 = vld [vmem:[%s1388_s25 + $0x20] sm:$0xff]  ;;  %v728_v15 = vld [vmem:[%s1388_s25 + $0x18] sm:$0xff]  ;;  %vm349_vm11 = vcmask 1047680   ;;  %s1209_s7 = smov 113  }
  0x58   : > { %s1943_s26 = smov (!%p283_p13, %s1263_s26), 1  ;;  %s992_s6 = sld [smem:[#allocation3 + $0x9]]  ;;  %v730_v10 = vld [vmem:[%s1388_s25 + $0x28] sm:$0xff]  ;;  %v731_v27 = vld [vmem:[%s1388_s25 + $0x30] sm:$0xff]  ;;  %v732_v32 = vld [vmem:[%s1388_s25 + $0x38] sm:$0xff] }
  0x59   : > { %s1396_s13 = sshll.u32 %s1943_s26, 4  ;;  %s1207_s26 = smov 16  }
  0x5a   : > { %s287_s12 = scalar_lea.vmem %s1926_s3, %s1396_s13  ;;  %s1532_s9 = sld [smem:[#allocation3 + $0xa]] }
  0x5b   : > { %v1402_v0 = vld [vmem:[%s287_s12] sm:$0xff]  ;;  %v1406_v1 = vld [vmem:[%s287_s12 + $0x8] sm:$0xff]  ;;  %s297_s28 = scalar_lea.vmem %s1928_s5, %s1396_s13  ;;  %s1210_s8 = smov 127  }
  0x5c   : > { %vm322_vm0 = vcmp.eq.s32.totalorder %v1402_v0, 0  ;;  %vm324_vm1 = vcmp.eq.s32.totalorder %v1402_v0, 1  ;;  %v330_v2 = vstv %s990_s11  ;;  %vm323_vm2 = vcmp.eq.s32.totalorder %v1406_v1, 0  ;;  %s989_s29 = sld [smem:[#allocation3 + $0x6]] }
  0x5d   : > { %v331_v3 = vstv %s991_s19  ;;  %vm325_vm3 = vcmp.eq.s32.totalorder %v1406_v1, 1  ;;  %vm326_vm4 = vcmp.eq.s32.totalorder %v1402_v0, 2  ;;  %vm327_vm5 = vcmp.eq.s32.totalorder %v1406_v1, 2  ;;  %s984_s10 = sld [smem:[#allocation3 + $0x1]]  ;;  %s292_s19 = scalar_lea.vmem %s1927_s4, %s1396_s13 }
  0x5e   : > { %v1414_v6 = vsel %vm322_vm0, %v330_v2, %v331_v3  ;;  %v1418_v7 = vsel %vm324_vm1, %v330_v2, %v331_v3  ;;  %v733_v11 = vstv %s992_s6  ;;  %v1432_v13 = vsel %vm323_vm2, %v330_v2, %v331_v3  ;;  %s300_s17 = sld [smem:[#allocation3]] }
  0x5f   : > { %350 = vrot.lane.b32.xlu0 %v1414_v6, %s1207_s26  ;;  %356 = vrot.lane.b32.xlu1 %v1418_v7, %s1207_s26  ;;  %v1428_v12 = vmul.f32 %v733_v11, %v725_v4  ;;  %v1436_v14 = vsel %vm325_vm3, %v330_v2, %v331_v3  ;;  %v1440_v16 = vmul.f32 %v733_v11, %v727_v5  ;;  %vm328_vm7 = vcmp.eq.s32.totalorder %v1402_v0, 3  ;;  %s985_s18 = sld [smem:[#allocation3 + $0x2]] }
  0x60   : > { %v1442_v17 = vmul.f32 %v733_v11, %v726_v8  ;;  %v1444_v18 = vmul.f32 %v733_v11, %v729_v9  ;;  %v1446_v19 = vmul.f32 %v733_v11, %v730_v10  ;;  %v1457_v22 = vmul.f32 %v733_v11, %v728_v15  ;;  %s1639_s21 = sld [smem:[#allocation3 + $0x4]] }
  0x61   : > { %v794_v20 = vsel %vm322_vm0, %v1428_v12, -inf  ;;  %v796_v21 = vsel %vm324_vm1, %v1440_v16, -inf  ;;  %vm329_vm8 = vcmp.eq.s32.totalorder %v1406_v1, 3  ;;  %v742_v23 = vsel %vm634_vm6, %v1428_v12, -inf  ;;  %s1646_s15 = sld [smem:[#allocation3 + $0x5]] }
  0x62   : > { %v1466_v24 = vsel %vm326_vm4, %v330_v2, %v331_v3  ;;  %v744_v25 = vsel %vm634_vm6, %v1444_v18, -inf  ;;  %v1472_v26 = vsel %vm327_vm5, %v330_v2, %v331_v3  ;;  %v743_v28 = vsel %vm634_vm6, %v1440_v16, -inf }
  0x63   : > { %353 = vrot.lane.b32.xlu0 %v1432_v13, %s1207_s26  ;;  %359 = vrot.lane.b32.xlu1 %v1436_v14, %s1207_s26  ;;  %v749_v29 = vsel %vm634_vm6, %v1442_v17, -inf  ;;  %v798_v30 = vsel %vm326_vm4, %v1444_v18, -inf  ;;  %v751_v31 = vsel %vm634_vm6, %v1446_v19, -inf  ;;  %v802_v33 = vsel %vm634_vm6, %v794_v20, -inf }
  0x64   : > { %v803_v34 = vsel %vm634_vm6, %v796_v21, -inf  ;;  %v795_v35 = vsel %vm323_vm2, %v1442_v17, -inf  ;;  %v804_v36 = vsel %vm634_vm6, %v798_v30, -inf  ;;  %v750_v37 = vsel %vm634_vm6, %v1457_v22, -inf }
  0x65   : > { %v797_v38 = vsel %vm325_vm3, %v1457_v22, -inf  ;;  %v745_v39 = vmax.f32 %v742_v23, %v744_v25  ;;  %v740_v40 = vmul.f32 %v733_v11, %v731_v27  ;;  %v752_v41 = vmax.f32 %v749_v29, %v751_v31 }
  0x66   : > { %v1502_v42 = vsel %vm328_vm7, %v330_v2, %v331_v3  ;;  %v1506_v43 = vsel %vm329_vm8, %v330_v2, %v331_v3  ;;  %v741_v44 = vmul.f32 %v733_v11, %v732_v32  ;;  %v805_v45 = vmax.f32 %v802_v33, %v804_v36 }
  0x67   : > { %362 = vrot.lane.b32.xlu0 %v1466_v24, %s1207_s26  ;;  %365 = vrot.lane.b32.xlu1 %v1472_v26, %s1207_s26  ;;  %v799_v46 = vsel %vm327_vm5, %v1446_v19, -inf  ;;  %v746_v47 = vsel %vm634_vm6, %v740_v40, -inf  ;;  %v800_v48 = vsel %vm328_vm7, %v740_v40, -inf  ;;  %v809_v53 = vsel %vm634_vm6, %v795_v35, -inf }
  0x68   : > { %v747_v49 = vmax.f32 %v743_v28, %v746_v47  ;;  %v806_v50 = vsel %vm634_vm6, %v800_v48, -inf  ;;  %v753_v51 = vsel %vm634_vm6, %v741_v44, -inf  ;;  %v801_v52 = vsel %vm329_vm8, %v741_v44, -inf }
  0x69   : > { %v807_v54 = vmax.f32 %v803_v34, %v806_v50  ;;  %v754_v55 = vmax.f32 %v750_v37, %v753_v51  ;;  %v810_v56 = vsel %vm634_vm6, %v797_v38, -inf  ;;  %v811_v57 = vsel %vm634_vm6, %v799_v46, -inf }
  0x6a   : > { %v748_v58 = vmax.f32 %v745_v39, %v747_v49  ;;  %v813_v59 = vsel %vm634_vm6, %v801_v52, -inf  ;;  %v812_v2 = vmax.f32 %v809_v53, %v811_v57  ;;  %v1208_v53 = vmov 0.0  }
  0x6b   : > { %368 = vrot.lane.b32.xlu0 %v1502_v42, %s1207_s26  ;;  %371 = vrot.lane.b32.xlu1 %v1506_v43, %s1207_s26  ;;  %v808_v60 = vmax.f32 %v805_v45, %v807_v54  ;;  %v755_v61 = vmax.f32 %v752_v41, %v754_v55  ;;  %v814_v5 = vmax.f32 %v810_v56, %v813_v59 }
  0x6c   : > { %v756_v62 = vsub.f32 %v1428_v12, %v748_v58  ;;  %v758_v63 = vsub.f32 %v1440_v16, %v748_v58  ;;  %v760_v0 = vsub.f32 %v1444_v18, %v748_v58  ;;  %v762_v1 = vsub.f32 %v740_v40, %v748_v58 }
  0x6d   : > { %v816_v3 = vsub.f32 %v808_v60, %v748_v58  ;;  %v757_v4 = vsub.f32 %v1442_v17, %v755_v61  ;;  %v759_v11 = vsub.f32 %v1457_v22, %v755_v61  ;;  %v761_v20 = vsub.f32 %v1446_v19, %v755_v61 }
  0x6e   : > { %v764_v8 = vmul.f32 1.442695, %v756_v62  ;;  %v768_v9 = vmul.f32 1.442695, %v758_v63  ;;  %v772_v10 = vmul.f32 1.442695, %v760_v0  ;;  %v763_v21 = vsub.f32 %v741_v44, %v755_v61 }
  0x6f   : > { %v776_v15 = vmul.f32 1.442695, %v762_v1  ;;  %v818_v12 = vmul.f32 1.442695, %v816_v3  ;;  %v766_v16 = vmul.f32 1.442695, %v757_v4  ;;  %v815_v18 = vmax.f32 %v812_v2, %v814_v5 }
  0x70   : > { %1052 = vpow2.f32 %v764_v8  ;;  %v770_v23 = vmul.f32 1.442695, %v759_v11  ;;  %v774_v25 = vmul.f32 1.442695, %v761_v20  ;;  %v778_v17 = vmul.f32 1.442695, %v763_v21 }
  0x71   : > { %1054 = vpow2.f32 %v768_v9  ;;  %v817_v27 = vsub.f32 %v815_v18, %v755_v61  ;;  %v822_v40 = vstv %s1532_s9 }
  0x72   : > { %1056 = vpow2.f32 %v772_v10 }
  0x73   : > { %1058 = vpow2.f32 %v776_v15  ;;  %v820_v22 = vmul.f32 1.442695, %v817_v27 }
  0x74   : > { %1060 = vpow2.f32 %v818_v12 }
  0x75   : > { %1062 = vpow2.f32 %v766_v16 }
  0x76   : > { %1064 = vpow2.f32 %v770_v23 }
  0x77   : > { %1066 = vpow2.f32 %v774_v25 }
  0x78   : > { %1068 = vpow2.f32 %v778_v17 }
  0x79   : > { %1070 = vpow2.f32 %v820_v22 }
  0x7d   : > { %v1053_v19 = vpop.eup %1052 }
  0x7e   : > { %v1055_v28 = vpop.eup %1054  ;;  %v780_v29 = vsel %vm634_vm6, %v1053_v19, 0.0 }
  0x7f   : > { %v1057_v30 = vpop.eup %1056  ;;  %v781_v31 = vsel %vm634_vm6, %v1055_v28, 0.0 }
  0x80   : > { %v1059_v32 = vpop.eup %1058  ;;  %v782_v33 = vadd.f32 %v781_v31, %v780_v29  ;;  %v783_v34 = vsel %vm634_vm6, %v1057_v30, 0.0 }
  0x81   : > { %v1061_v35 = vpop.eup %1060  ;;  %v785_v36 = vsel %vm634_vm6, %v1059_v32, 0.0 }
  0x82   : > { %v1063_v37 = vpop.eup %1062  ;;  %v784_v38 = vadd.f32 %v783_v34, %v782_v33  ;;  %v626_v33 = vld [vmem:[%s1382_s14] sm:$0xff]  ;;  %v627_v34 = vld [vmem:[%s1382_s14 + $0x8] sm:$0xff] }
  0x83   : > { %v1065_v39 = vpop.eup %1064  ;;  %v787_v41 = vsel %vm634_vm6, %v1063_v37, 0.0  ;;  %v632_v37 = vld [vmem:[%s1382_s14 + $0x30] sm:$0xff] }
  0x84   : > { %v1067_v44 = vpop.eup %1066  ;;  %v786_v45 = vadd.f32 %v785_v36, %v784_v38  ;;  %v788_v46 = vsel %vm634_vm6, %v1065_v39, 0.0  ;;  %v630_v36 = vld [vmem:[%s1382_s14 + $0x20] sm:$0xff]  ;;  %v629_v38 = vld [vmem:[%s1382_s14 + $0x18] sm:$0xff]  ;;  %v631_v39 = vld [vmem:[%s1382_s14 + $0x28] sm:$0xff] }
  0x85   : > { %v1069_v47 = vpop.eup %1068  ;;  %v789_v48 = vadd.f32 %v788_v46, %v787_v41  ;;  %v790_v49 = vsel %vm634_vm6, %v1067_v44, 0.0  ;;  %v635_v41 = vsel %vm634_vm6, %v626_v33, -inf  ;;  %v639_v46 = vsel %vm634_vm6, %v632_v37, -inf }
  0x86   : > { %v823_v50 = vmul.f32 %v822_v40, %v786_v45  ;;  %v792_v51 = vsel %vm634_vm6, %v1069_v47, 0.0  ;;  %v1071_v56 = vpop.eup %1070  ;;  %v637_v45 = vsel %vm634_vm6, %v630_v36, -inf  ;;  %v642_v47 = vsel %vm634_vm6, %v627_v34, -inf }
  0x87   : > { %v791_v52 = vadd.f32 %v790_v49, %v789_v48  ;;  %v643_v48 = vsel %vm634_vm6, %v629_v38, -inf  ;;  %v644_v49 = vsel %vm634_vm6, %v631_v39, -inf }
  0x88   : > { %vm825_vm9 = vcmp.ge.f32.partialorder %v1061_v35, %v823_v50  ;;  %v628_v35 = vld [vmem:[%s1382_s14 + $0x10] sm:$0xff] }
  0x89   : > { %v827_v54 = vsel %vm825_vm9, 1.0, %v1208_v53  ;;  %v793_v55 = vadd.f32 %v792_v51, %v791_v52  ;;  %v636_v44 = vsel %vm634_vm6, %v628_v35, -inf  ;;  %v638_v51 = vmax.f32 %v635_v41, %v637_v45 }
  0x8a   : > { %829 = vst.msk [vmem:[%s297_s28] sm:$0xff] %vm634_vm6, %v827_v54  ;;  %v640_v52 = vmax.f32 %v636_v44, %v639_v46  ;;  %v1644_v44 = vstv %s989_s29 }
  0x8b   : > { %v824_v57 = vmul.f32 %v822_v40, %v793_v55  ;;  %v633_v40 = vld [vmem:[%s1382_s14 + $0x38] sm:$0xff]  ;;  %s1642_s14 = sld [smem:[#allocation3 + $0x3]] }
  0x8c   : > { %v646_v50 = vsel %vm634_vm6, %v633_v40, -inf  ;;  %v641_v55 = vmax.f32 %v638_v51, %v640_v52 }
  0x8d   : > { %vm826_vm10 = vcmp.ge.f32.partialorder %v1071_v56, %v824_v57  ;;  %v647_v54 = vmax.f32 %v643_v48, %v646_v50  ;;  %v1648_v48 = vstv %s300_s17  ;;  %v1656_v50 = vmul.f32 %v1644_v44, %v1414_v6 }
  0x8e   : > { %v828_v58 = vsel %vm826_vm10, 1.0, %v1208_v53  ;;  %v645_v53 = vmax.f32 %v642_v47, %v644_v49  ;;  %v1605_v57 = vsub.f32 %v626_v33, %v641_v55  ;;  %v340_v47 = vstv %s984_s10 }
  0x8f   : > { %830 = vst.msk [vmem:[%s297_s28 + $0x8] sm:$0xff] %vm634_vm6, %v828_v58 }
  0x90   : > { %v648_v56 = vmax.f32 %v645_v53, %v647_v54  ;;  %v1665_v53 = vmul.f32 %v1644_v44, %v1418_v7  ;;  %v1669_v54 = vmul.f32 %v1644_v44, %v1466_v24 }
  0x92   : > { %v1607_v58 = vsub.f32 %v627_v34, %v648_v56 }
  0xd1   : > { %v351_v59 = vpop.permute.xlu0 %350  ;;  %v357_v60 = vpop.permute.xlu1 %356 }
  0xd2   : > { %v352_v61 = vsel %vm349_vm11, %v351_v59, %v1414_v6  ;;  %v358_v62 = vsel %vm349_vm11, %v357_v60, %v1418_v7  ;;  %v1609_v59 = vsub.f32 %v628_v35, %v641_v55  ;;  %v1611_v60 = vsub.f32 %v629_v38, %v648_v56 }
  0xd3   : > { %374 = vrot.lane.b32.xlu0 %v352_v61, %s1207_s26  ;;  %v657_v61 = vmul.f32 1.442695, %v1605_v57 }
  0xd5   : > { %v354_v63 = vpop.permute.xlu0 %353  ;;  %v360_v0 = vpop.permute.xlu1 %359  ;;  %1072 = vpow2.f32 %v657_v61 }
  0xd6   : > { %v355_v1 = vsel %vm349_vm11, %v354_v63, %v1432_v13  ;;  %v361_v2 = vsel %vm349_vm11, %v360_v0, %v1436_v14  ;;  %v1615_v63 = vsub.f32 %v630_v36, %v641_v55  ;;  %v661_v0 = vmul.f32 1.442695, %v1609_v59 }
  0xd7   : > { %378 = vrot.lane.b32.xlu0 %v358_v62, %s1207_s26  ;;  %376 = vrot.lane.b32.xlu1 %v355_v1, %s1207_s26  ;;  %v659_v62 = vmul.f32 1.442695, %v1607_v58  ;;  %v1618_v1 = vsub.f32 %v631_v39, %v648_v56  ;;  %v311_v36 = vlaneseq }
  0xd9   : > { %v363_v3 = vpop.permute.xlu0 %362  ;;  %v366_v4 = vpop.permute.xlu1 %365  ;;  %1074 = vpow2.f32 %v659_v62  ;;  %v1637_v39 = vand.u32 127, %v311_v36  ;;  %v1658_v51 = vshrl.u32 %v311_v36, 7 }
  0xda   : > { %v364_v5 = vsel %vm349_vm11, %v363_v3, %v1466_v24  ;;  %v367_v8 = vsel %vm349_vm11, %v366_v4, %v1472_v26  ;;  %v1621_v3 = vsub.f32 %v632_v37, %v641_v55  ;;  %1076 = vpow2.f32 %v661_v0 }
  0xdb   : > { %380 = vrot.lane.b32.xlu1 %v361_v2, %s1207_s26  ;;  %382 = vrot.lane.b32.xlu0 %v364_v5, %s1207_s26  ;;  %v663_v2 = vmul.f32 1.442695, %v1611_v60  ;;  %v665_v4 = vmul.f32 1.442695, %v1615_v63  ;;  %v1624_v5 = vsub.f32 %v633_v40, %v648_v56  ;;  %vm320_vm12 = vcmp.eq.s32.totalorder %v1637_v39, 0 }
  0xdc   : > { %vm321_vm13 = vcmp.eq.s32.totalorder %v1637_v39, 15  ;;  %v1673_v55 = vmul.f32 %v1644_v44, %v1502_v42  ;;  %v341_v56 = vmul.f32 %v340_v47, %v1414_v6  ;;  %vm525_vm14 = vcmp.lt.s32.totalorder %v1658_v51, 1 }
  0xdd   : > { %v369_v9 = vpop.permute.xlu0 %368  ;;  %v372_v10 = vpop.permute.xlu1 %371  ;;  %1078 = vpow2.f32 %v663_v2  ;;  %v342_v2 = vmul.f32 %v340_v47, %v1432_v13  ;;  %vm571_vm15 = vcmp.lt.s32.totalorder %v1658_v51, 7  ;;  %vm316_vm0 = vcmp.eq.s32.totalorder %v1658_v51, 0 }
  0xde   : > { %v370_v11 = vsel %vm349_vm11, %v369_v9, %v1502_v42  ;;  %v373_v15 = vsel %vm349_vm11, %v372_v10, %v1506_v43  ;;  %1080 = vpow2.f32 %v665_v4  ;;  %v669_v9 = vmul.f32 1.442695, %v1621_v3 }
  0xdf   : > { %384 = vrot.lane.b32.xlu1 %v367_v8, %s1207_s26  ;;  %386 = vrot.lane.b32.xlu0 %v370_v11, %s1207_s26  ;;  %v667_v8 = vmul.f32 1.442695, %v1618_v1  ;;  %v671_v10 = vmul.f32 1.442695, %v1624_v5  ;;  %v1678_v4 = vstv %s985_s18 }
  0xe1   : > { %1082 = vpow2.f32 %v667_v8 }
  0xe2   : > { %1084 = vpow2.f32 %v669_v9  ;;  %v1073_v11 = vpop.eup %1072 }
  0xe3   : > { %388 = vrot.lane.b32.xlu1 %v373_v15, %s1207_s26  ;;  %1086 = vpow2.f32 %v671_v10  ;;  %v343_v10 = vmul.f32 %v340_v47, %v1418_v7 }
  0xe6   : > { %v1075_v15 = vpop.eup %1074 }
 0x145   : > { %v375_v20 = vpop.permute.xlu0 %374 }
 0x146   : > { %v390_v12 = vsel %vm349_vm11, %v375_v20, %v1414_v6  ;;  %v1077_v20 = vpop.eup %1076 }
 0x147   : > { %408 = vrot.lane.b32.xlu0 %v390_v12, %s1209_s7 }
 0x149   : > { %v377_v21 = vpop.permute.xlu1 %376  ;;  %v379_v16 = vpop.permute.xlu0 %378 }
 0x14a   : > { %v391_v18 = vsel %vm349_vm11, %v377_v21, %v1432_v13  ;;  %v392_v23 = vsel %vm349_vm11, %v379_v16, %v1418_v7  ;;  %v673_v21 = vsel %vm634_vm6, %v1073_v11, 0.0  ;;  %v674_v16 = vsel %vm634_vm6, %v1077_v20, 0.0 }
 0x14b   : > { %410 = vrot.lane.b32.xlu1 %v391_v18, %s1209_s7  ;;  %412 = vrot.lane.b32.xlu0 %v392_v23, %s1209_s7  ;;  %v344_v11 = vmul.f32 %v340_v47, %v1436_v14 }
 0x14d   : > { %v381_v25 = vpop.permute.xlu1 %380  ;;  %v383_v17 = vpop.permute.xlu0 %382 }
 0x14e   : > { %v393_v27 = vsel %vm349_vm11, %v381_v25, %v1436_v14  ;;  %v394_v22 = vsel %vm349_vm11, %v383_v17, %v1466_v24 }
 0x14f   : > { %414 = vrot.lane.b32.xlu1 %v393_v27, %s1209_s7  ;;  %416 = vrot.lane.b32.xlu0 %v394_v22, %s1209_s7 }
 0x151   : > { %v385_v19 = vpop.permute.xlu1 %384  ;;  %v387_v29 = vpop.permute.xlu0 %386 }
 0x152   : > { %v395_v28 = vsel %vm349_vm11, %v385_v19, %v1472_v26  ;;  %v396_v30 = vsel %vm349_vm11, %v387_v29, %v1502_v42 }
 0x153   : > { %418 = vrot.lane.b32.xlu1 %v395_v28, %s1209_s7  ;;  %459 = vrot.lane.b32.xlu0 %v390_v12, %s1210_s8  ;;  %v1079_v12 = vpop.eup %1078 }
 0x154   : > { %v681_v25 = vsel %vm634_vm6, %v1079_v12, 0.0 }
 0x155   : > { %v389_v31 = vpop.permute.xlu1 %388 }
 0x156   : > { %v397_v32 = vsel %vm349_vm11, %v389_v31, %v1506_v43 }
 0x157   : > { %461 = vrot.lane.b32.xlu1 %v391_v18, %s1210_s8  ;;  %463 = vrot.lane.b32.xlu0 %v392_v23, %s1210_s8  ;;  %v1081_v18 = vpop.eup %1080  ;;  %v680_v23 = vsel %vm634_vm6, %v1075_v15, 0.0  ;;  %v345_v15 = vmul.f32 %v340_v47, %v1466_v24 }
 0x158   : > { %v1083_v17 = vpop.eup %1082  ;;  %v682_v19 = vadd.f32 %v681_v25, %v680_v23  ;;  %v1700_v25 = vstv %s1642_s14 }
 0x159   : > { %v683_v29 = vsel %vm634_vm6, %v1083_v17, 0.0  ;;  %v1704_v17 = vstv %s1646_s15 }
 0x15a   : > { %v684_v33 = vadd.f32 %v683_v29, %v682_v19 }
 0x15b   : > { %465 = vrot.lane.b32.xlu1 %v393_v27, %s1210_s8  ;;  %420 = vrot.lane.b32.xlu0 %v396_v30, %s1209_s7  ;;  %v675_v27 = vadd.f32 %v674_v16, %v673_v21  ;;  %v346_v21 = vmul.f32 %v340_v47, %v1472_v26  ;;  %v1693_v16 = vstv %s1639_s21 }
 0x15f   : > { %422 = vrot.lane.b32.xlu1 %v397_v32, %s1209_s7  ;;  %467 = vrot.lane.b32.xlu0 %v394_v22, %s1210_s8  ;;  %v676_v22 = vsel %vm634_vm6, %v1081_v18, 0.0 }
 0x160   : > { %v677_v31 = vadd.f32 %v676_v22, %v675_v27  ;;  %v1708_v27 = vmul.f32 %v1644_v44, %v1432_v13 }
 0x163   : > { %469 = vrot.lane.b32.xlu1 %v395_v28, %s1210_s8  ;;  %471 = vrot.lane.b32.xlu0 %v396_v30, %s1210_s8  ;;  %v1085_v28 = vpop.eup %1084 }
 0x164   : > { %v1087_v30 = vpop.eup %1086 }
 0x165   : > { %v685_v34 = vsel %vm634_vm6, %v1087_v30, 0.0 }
 0x166   : > { %v686_v37 = vadd.f32 %v685_v34, %v684_v33 }
 0x167   : > { %473 = vrot.lane.b32.xlu1 %v397_v32, %s1210_s8  ;;  %v678_v32 = vsel %vm634_vm6, %v1085_v28, 0.0 }
 0x168   : > { %v679_v35 = vadd.f32 %v678_v32, %v677_v31 }
 0x16a   : > { %1088 = vlog2.f32 %v679_v35 }
 0x16b   : > { %1090 = vlog2.f32 %v686_v37  ;;  %v1734_v37 = vmul.f32 %v340_v47, %v1502_v42 }
 0x177   : > { %v1089_v20 = vpop.eup %1088 }
 0x178   : > { %v1091_v18 = vpop.eup %1090 }
 0x1b9   : > { %v409_v38 = vpop.permute.xlu0 %408 }
 0x1ba   : > { %v432_v49 = vsel %vm320_vm12, %v1414_v6, %v409_v38 }
 0x1bb   : > { %v441_v0 = vmul.f32 %v1648_v48, %v432_v49 }
 0x1bd   : > { %v411_v40 = vpop.permute.xlu1 %410  ;;  %v413_v41 = vpop.permute.xlu0 %412  ;;  %v449_v28 = vadd.f32 %v441_v0, %v341_v56  ;;  %v1741_v56 = vmul.f32 %v1644_v44, %v1436_v14 }
 0x1be   : > { %v433_v52 = vsel %vm320_vm12, %v1432_v13, %v411_v40  ;;  %v434_v12 = vsel %vm320_vm12, %v1418_v7, %v413_v41 }
 0x1bf   : > { %v442_v9 = vmul.f32 %v1648_v48, %v433_v52  ;;  %v443_v33 = vmul.f32 %v1648_v48, %v434_v12 }
 0x1c1   : > { %v415_v45 = vpop.permute.xlu1 %414  ;;  %v417_v46 = vpop.permute.xlu0 %416  ;;  %v450_v32 = vadd.f32 %v442_v9, %v342_v2  ;;  %v451_v0 = vadd.f32 %v443_v33, %v343_v10 }
 0x1c2   : > { %v435_v29 = vsel %vm320_vm12, %v1436_v14, %v415_v45  ;;  %v436_v34 = vsel %vm320_vm12, %v1466_v24, %v417_v46 }
 0x1c3   : > { %v444_v38 = vmul.f32 %v1648_v48, %v435_v29  ;;  %v445_v52 = vmul.f32 %v1648_v48, %v436_v34 }
 0x1c5   : > { %v419_v61 = vpop.permute.xlu1 %418  ;;  %v460_v62 = vpop.permute.xlu0 %459  ;;  %v453_v29 = vadd.f32 %v445_v52, %v345_v15 }
 0x1c6   : > { %v483_v8 = vsel %vm321_vm13, %v1414_v6, %v460_v62  ;;  %v1696_v6 = vadd.s32 8, %v1658_v51  ;;  %v437_v36 = vsel %vm320_vm12, %v1472_v26, %v419_v61  ;;  %v1747_v62 = vmul.f32 %v340_v47, %v1506_v43 }
 0x1c7   : > { %v492_v23 = vmul.f32 %v1678_v4, %v483_v8  ;;  %v446_v2 = vmul.f32 %v1648_v48, %v437_v36 }
 0x1c8   : > { %vm319_vm1 = vcmp.eq.s32.totalorder %v1696_v6, 15 }
 0x1c9   : > { %v462_v22 = vpop.permute.xlu1 %461  ;;  %v464_v19 = vpop.permute.xlu0 %463  ;;  %v500_v40 = vadd.f32 %v492_v23, %v449_v28  ;;  %v454_v33 = vadd.f32 %v446_v2, %v346_v21 }
 0x1ca   : > { %v484_v30 = vsel %vm321_vm13, %v1432_v13, %v462_v22  ;;  %v485_v31 = vsel %vm321_vm13, %v1418_v7, %v464_v19  ;;  %v1729_v13 = vmul.f32 0.6931472, %v1089_v20  ;;  %v1731_v7 = vmul.f32 0.6931472, %v1091_v18 }
 0x1cb   : > { %v493_v35 = vmul.f32 %v1678_v4, %v484_v30  ;;  %v494_v45 = vmul.f32 %v1678_v4, %v485_v31  ;;  %v517_v22 = vrot.slane %v500_v40, 7  ;;  %v563_v30 = vrot.slane %v500_v40, 1 }
 0x1cc   : > { %v693_v23 = vsub.f32 %v1609_v59, %v1729_v13  ;;  %v694_v10 = vsub.f32 %v1611_v60, %v1731_v7  ;;  %v1761_v31 = vmul.f32 %v1644_v44, %v1472_v26  ;;  %v509_v36 = vmul.f32 %v1693_v16, %v500_v40 }
 0x1cd   : > { %v501_v41 = vadd.f32 %v493_v35, %v450_v32  ;;  %v466_v46 = vpop.permute.xlu1 %465  ;;  %v421_v49 = vpop.permute.xlu0 %420  ;;  %v502_v47 = vadd.f32 %v494_v45, %v451_v0 }
 0x1ce   : > { %v486_v61 = vsel %vm321_vm13, %v1436_v14, %v466_v46  ;;  %v452_v14 = vadd.f32 %v444_v38, %v344_v11  ;;  %v438_v38 = vsel %vm320_vm12, %v1502_v42, %v421_v49 }
 0x1cf   : > { %v521_v8 = vrot.slane %v501_v41, 7  ;;  %v495_v9 = vmul.f32 %v1678_v4, %v486_v61  ;;  %v567_v18 = vrot.slane %v501_v41, 1  ;;  %v510_v45 = vmul.f32 %v1693_v16, %v501_v41 }
 0x1d0   : > { %v518_v46 = vrot.slane %v502_v47, 7  ;;  %v447_v20 = vmul.f32 %v1648_v48, %v438_v38 }
 0x1d1   : > { %v423_v19 = vpop.permute.xlu1 %422  ;;  %v468_v28 = vpop.permute.xlu0 %467  ;;  %v526_v11 = vsel %vm525_vm14, %v517_v22, %v521_v8  ;;  %v530_v34 = vsel %vm525_vm14, %v521_v8, %v517_v22  ;;  %v503_v35 = vadd.f32 %v495_v9, %v452_v14  ;;  %v576_v15 = vsel %vm571_vm15, %v567_v18, %v563_v30 }
 0x1d2   : > { %v487_v21 = vsel %vm321_vm13, %v1466_v24, %v468_v28  ;;  %v538_v2 = vsel %vm316_vm0, %v500_v40, %v530_v34  ;;  %v548_v8 = vmul.f32 %v1700_v25, %v526_v11  ;;  %v511_v9 = vmul.f32 %v1693_v16, %v502_v47 }
 0x1d3   : > { %v522_v52 = vrot.slane %v503_v35, 7  ;;  %v568_v61 = vrot.slane %v503_v35, 1  ;;  %v564_v14 = vrot.slane %v502_v47, 1  ;;  %v585_v49 = vsel %vm319_vm1, %v501_v41, %v576_v15 }
 0x1d4   : > { %v496_v28 = vmul.f32 %v1678_v4, %v487_v21  ;;  %v547_v34 = vmul.f32 %v1700_v25, %v538_v2  ;;  %v512_v15 = vmul.f32 %v1693_v16, %v503_v35 }
 0x1d5   : > { %v470_v0 = vpop.permute.xlu1 %469  ;;  %v527_v24 = vsel %vm525_vm14, %v518_v46, %v522_v52  ;;  %v531_v22 = vsel %vm525_vm14, %v522_v52, %v518_v46  ;;  %v577_v11 = vsel %vm571_vm15, %v568_v61, %v564_v14  ;;  %v472_v52 = vpop.permute.xlu0 %471 }
 0x1d6   : > { %v540_v32 = vsel %vm316_vm0, %v502_v47, %v531_v22  ;;  %v550_v40 = vmul.f32 %v1700_v25, %v527_v24  ;;  %v488_v41 = vsel %vm321_vm13, %v1472_v26, %v470_v0  ;;  %v587_v21 = vsel %vm319_vm1, %v503_v35, %v577_v11 }
 0x1d7   : > { %v549_v46 = vmul.f32 %v1700_v25, %v540_v32  ;;  %v572_v24 = vsel %vm571_vm15, %v563_v30, %v567_v18  ;;  %v594_v22 = vmul.f32 %v1704_v17, %v585_v49  ;;  %v439_v26 = vsel %vm320_vm12, %v1506_v43, %v423_v19 }
 0x1d8   : > { %v556_v0 = vadd.f32 %v548_v8, %v510_v45  ;;  %v558_v2 = vadd.f32 %v550_v40, %v512_v15  ;;  %v573_v32 = vsel %vm571_vm15, %v564_v14, %v568_v61  ;;  %v497_v35 = vmul.f32 %v1678_v4, %v488_v41 }
 0x1d9   : > { %v474_v47 = vpop.permute.xlu1 %473  ;;  %v596_v11 = vmul.f32 %v1704_v17, %v587_v21  ;;  %v504_v12 = vadd.f32 %v496_v28, %v453_v29  ;;  %v489_v18 = vsel %vm321_vm13, %v1502_v42, %v472_v52  ;;  %v555_v38 = vadd.f32 %v547_v34, %v509_v36 }
 0x1da   : > { %v490_v30 = vsel %vm321_vm13, %v1506_v43, %v474_v47  ;;  %v557_v19 = vadd.f32 %v549_v46, %v511_v9  ;;  %v448_v45 = vmul.f32 %v1648_v48, %v439_v26  ;;  %v696_v61 = vsub.f32 %v1618_v1, %v1731_v7 }
 0x1db   : > { %v593_v8 = vmul.f32 %v1704_v17, %v572_v24  ;;  %v505_v14 = vadd.f32 %v497_v35, %v454_v33  ;;  %v498_v29 = vmul.f32 %v1678_v4, %v489_v18  ;;  %v1827_v49 = vmul.f32 %v1644_v44, %v1506_v43 }
 0x1dc   : > { %v602_v42 = vadd.f32 %v594_v22, %v556_v0  ;;  %v595_v39 = vmul.f32 %v1704_v17, %v573_v32  ;;  %v455_v36 = vadd.f32 %v447_v20, %v1734_v37  ;;  %v499_v9 = vmul.f32 %v1678_v4, %v490_v30 }
 0x1dd   : > { %v604_v48 = vadd.f32 %v596_v11, %v558_v2  ;;  %v519_v28 = vrot.slane %v504_v12, 7  ;;  %v523_v40 = vrot.slane %v505_v14, 7  ;;  %v569_v1 = vrot.slane %v505_v14, 1 }
 0x1de   : > { %v601_v41 = vadd.f32 %v593_v8, %v555_v38  ;;  %v603_v34 = vadd.f32 %v595_v39, %v557_v19  ;;  %v456_v33 = vadd.f32 %v448_v45, %v1747_v62  ;;  %v565_v15 = vrot.slane %v504_v12, 1 }
 0x1df   : > { %v514_v46 = vmul.f32 %v1693_v16, %v505_v14  ;;  %v528_v43 = vsel %vm525_vm14, %v519_v28, %v523_v40  ;;  %v532_v44 = vsel %vm525_vm14, %v523_v40, %v519_v28  ;;  %v506_v37 = vadd.f32 %v498_v29, %v455_v36 }
 0x1e0   : > { %v542_v4 = vsel %vm316_vm0, %v504_v12, %v532_v44  ;;  %v552_v20 = vmul.f32 %v1700_v25, %v528_v43  ;;  %v574_v21 = vsel %vm571_vm15, %v565_v15, %v569_v1  ;;  %v507_v52 = vadd.f32 %v499_v9, %v456_v33 }
 0x1e1   : > { %v621_v62 = vadd.f32 %v1741_v56, %v604_v48  ;;  %v513_v47 = vmul.f32 %v1693_v16, %v504_v12  ;;  %v551_v24 = vmul.f32 %v1700_v25, %v542_v4  ;;  %v578_v22 = vsel %vm571_vm15, %v569_v1, %v565_v15 }
 0x1e2   : > { %v618_v26 = vadd.f32 %v1656_v50, %v601_v41  ;;  %v619_v0 = vadd.f32 %v1708_v27, %v602_v42  ;;  %v560_v2 = vadd.f32 %v552_v20, %v514_v46  ;;  %v589_v32 = vsel %vm319_vm1, %v505_v14, %v578_v22 }
 0x1e3   : > { %v620_v35 = vadd.f32 %v1665_v53, %v603_v34  ;;  %v559_v11 = vadd.f32 %v551_v24, %v513_v47  ;;  %v597_v56 = vmul.f32 %v1704_v17, %v574_v21  ;;  %v598_v12 = vmul.f32 %v1704_v17, %v589_v32 }
 0x1e4   : > { %v520_v18 = vrot.slane %v506_v37, 7  ;;  %v566_v30 = vrot.slane %v506_v37, 1  ;;  %v524_v38 = vrot.slane %v507_v52, 7  ;;  %v570_v19 = vrot.slane %v507_v52, 1 }
 0x1e5   : > { %v702_v50 = vmul.f32 %v694_v10, %v621_v62  ;;  %v605_v27 = vadd.f32 %v597_v56, %v559_v11  ;;  %v606_v45 = vadd.f32 %v598_v12, %v560_v2  ;;  %v516_v8 = vmul.f32 %v1693_v16, %v507_v52 }
 0x1e6   : > { %v529_v53 = vsel %vm525_vm14, %v520_v18, %v524_v38  ;;  %v533_v14 = vsel %vm525_vm14, %v524_v38, %v520_v18  ;;  %v575_v29 = vsel %vm571_vm15, %v566_v30, %v570_v19  ;;  %v579_v42 = vsel %vm571_vm15, %v570_v19, %v566_v30 }
 0x1e7   : > { %v622_v39 = vadd.f32 %v1669_v54, %v605_v27  ;;  %v623_v60 = vadd.f32 %v1761_v31, %v606_v45  ;;  %v544_v10 = vsel %vm316_vm0, %v506_v37, %v533_v14  ;;  %v554_v36 = vmul.f32 %v1700_v25, %v529_v53 }
 0x1e8   : > { %v701_v9 = vmul.f32 %v693_v23, %v620_v35  ;;  %v515_v48 = vmul.f32 %v1693_v16, %v506_v37  ;;  %v553_v28 = vmul.f32 %v1700_v25, %v544_v10  ;;  %v591_v40 = vsel %vm319_vm1, %v507_v52, %v579_v42 }
 0x1e9   : > { %v1935_v54 = vsub.f32 %v1607_v58, %v1731_v7  ;;  %v704_v1 = vmul.f32 %v696_v61, %v623_v60  ;;  %v562_v51 = vadd.f32 %v554_v36, %v516_v8  ;;  %v600_v41 = vmul.f32 %v1704_v17, %v591_v40 }
 0x1ea   : > { %v1936_v34 = vsub.f32 %v1605_v57, %v1729_v13  ;;  %v1937_v16 = vsub.f32 %v1615_v63, %v1729_v13  ;;  %v561_v25 = vadd.f32 %v553_v28, %v515_v48  ;;  %v599_v6 = vmul.f32 %v1704_v17, %v575_v29 }
 0x1eb   : > { %v700_v31 = vmul.f32 %v1935_v54, %v619_v0  ;;  %v715_v33 = vsel %vm634_vm6, %v702_v50, 0.0  ;;  %v698_v58 = vsub.f32 %v1624_v5, %v1731_v7  ;;  %v608_v61 = vadd.f32 %v600_v41, %v562_v51 }
 0x1ec   : > { %v699_v59 = vmul.f32 %v1936_v34, %v618_v26  ;;  %v703_v23 = vmul.f32 %v1937_v16, %v622_v39  ;;  %v708_v15 = vsel %vm634_vm6, %v701_v9, 0.0  ;;  %v697_v46 = vsub.f32 %v1621_v3, %v1729_v13 }
 0x1ed   : > { %v607_v57 = vadd.f32 %v599_v6, %v561_v25  ;;  %v714_v43 = vsel %vm634_vm6, %v700_v31, 0.0  ;;  %v717_v63 = vsel %vm634_vm6, %v704_v1, 0.0  ;;  %v625_v44 = vadd.f32 %v1827_v49, %v608_v61 }
 0x1ee   : > { %v707_v17 = vsel %vm634_vm6, %v699_v59, 0.0  ;;  %v716_v37 = vadd.f32 %v715_v33, %v714_v43  ;;  %v710_v4 = vsel %vm634_vm6, %v703_v23, 0.0 }
 0x1ef   : > { %v624_v5 = vadd.f32 %v1673_v55, %v607_v57  ;;  %v709_v7 = vadd.f32 %v708_v15, %v707_v17  ;;  %v706_v20 = vmul.f32 %v698_v58, %v625_v44 }
 0x1f0   : > { %v718_v21 = vadd.f32 %v717_v63, %v716_v37 }
 0x1f1   : > { %v705_v52 = vmul.f32 %v697_v46, %v624_v5  ;;  %v711_v3 = vadd.f32 %v710_v4, %v709_v7  ;;  %v719_v13 = vsel %vm634_vm6, %v706_v20, 0.0 }
 0x1f2   : > { %v720_v47 = vadd.f32 %v719_v13, %v718_v21 }
 0x1f3   : > { %v712_v62 = vsel %vm634_vm6, %v705_v52, 0.0 }
 0x1f4   : > { %v713_v49 = vadd.f32 %v712_v62, %v711_v3  ;;  %v722_v24 = vsub.f32 0.0, %v720_v47 }
 0x1f6   : > { %v721_v22 = vsub.f32 0.0, %v713_v49  ;;  %724 = vst.msk [vmem:[%s292_s19 + $0x8] sm:$0xff] %vm634_vm6, %v722_v24 }
 0x1f8   : > { %723 = vst.msk [vmem:[%s292_s19] sm:$0xff] %vm634_vm6, %v721_v22 }
 0x1f9 PF: > { %p25_p2 = scmp.ge.s32.totalorder %s1266_s27, 4   ;;  %s1938_s23 = smov %s1192_s0 }
 0x1fa   : > { %s1939_s0 = smov %s1196_s24  ;;  %s1940_s24 = smov %s1276_s30 }
 0x1fb   : > { %s1941_s25 = smov %s1266_s27  ;;  %27 = sbr.rel (!%p25_p2) target bundleno = 20 (0x14), region = 100 }
 0x200   :  { %868 = vsyncpa [#allocation5], 1 }
 0x201   :  { %870 = vsyncpa [#allocation5 + $0x1], 1 }
 0x202   :  { %871 = vsyncpa [#allocation7], 1 }
 0x203   :  { %873 = vsyncpa [#allocation7 + $0x1], 1 }

</bundles_post_ra>
